<compile_context>
chip_gen: v5e
topology: v5e:2x2
jax: 0.10.0
libtpu: 0.0.40
codegen_flags: <defaults>
</compile_context>

<pallas_src>
import functools

import jax
import jax.numpy as jnp
from jax import lax
from jax.experimental import pallas as pl
from jax.experimental.pallas import tpu as pltpu


# ---------------------------------------------------------------------------
# Device-derived VMEM budgeting
# ---------------------------------------------------------------------------
def _device_vmem_bytes():
    try:
        info = pltpu.get_tpu_info()
        cap = getattr(info, "vmem_capacity_bytes", None)
        if cap:
            return int(cap)
    except Exception:
        pass
    return 64 * 1024 * 1024  # conservative default (v7x per-core VMEM)


_VMEM_BYTES = _device_vmem_bytes()
_SMALL_VMEM = _VMEM_BYTES <= 64 * 1024 * 1024          # v7x-like: 64 MiB, 2 TensorCores
_VMEM_LIMIT = min(_VMEM_BYTES // 2, 64 * 1024 * 1024)  # scoped limit handed to Mosaic


def _pick_block_rows(rows, stream_bytes_per_row, resident_bytes):
    """Largest row block that keeps (double-buffered streams + 2x resident weights)
    inside the device-derived VMEM budget.  Prefers an exact multiple-of-8 divisor of
    `rows`; otherwise returns a multiple-of-8 block and the caller's cdiv grid handles
    the masked ragged final block."""
    budget = (3 * _VMEM_LIMIT) // 4 - 2 * resident_bytes
    budget = max(budget, 1 << 20)
    cap = max(8, budget // max(stream_bytes_per_row, 1))
    cap = min(cap, 4096, rows)
    if _SMALL_VMEM and rows >= 16 and rows % 8 == 0:
        # only on 2-TensorCore (small-VMEM) parts: >=2 grid steps feed both cores;
        # on single-TC v5e/v6e this would just double per-step overhead.
        cap = min(cap, max(8, rows // 2))
    if cap >= rows:
        return rows
    cand = (cap // 8) * 8
    while cand >= 8:
        if rows % cand == 0:
            return cand
        cand -= 8
    return max(8, (cap // 8) * 8)  # ragged final block (masked stores via cdiv grid)


def _pick_block_q(seq_len):
    if seq_len <= 512:
        return seq_len
    cand = 512
    while cand >= 8:
        if seq_len % cand == 0:
            return cand
        cand -= 8
    return 512


def _const_spec(shape):
    return pl.BlockSpec(shape, lambda i: (0,) * len(shape))


# ---------------------------------------------------------------------------
# Shared LayerNorm (torch semantics: unbiased std, eps added to std), f32 stats
# ---------------------------------------------------------------------------
def _layer_norm_f32(x_f32, a_ref, b_ref, eps):
    n = x_f32.shape[-1]
    mean = jnp.mean(x_f32, axis=-1, keepdims=True)
    xc = x_f32 - mean
    var = jnp.sum(xc * xc, axis=-1, keepdims=True) * (1.0 / (n - 1))
    inv = pl.reciprocal(jnp.sqrt(var) + eps, approx=False)
    return a_ref[...].astype(jnp.float32) * (xc * inv) + b_ref[...].astype(jnp.float32)


# ---------------------------------------------------------------------------
# Kernel 1: LayerNorm1 + fused QKV projection -> q, k, v (no split / transpose)
# ---------------------------------------------------------------------------
def _ln_qkv_kernel(x_ref, a_ref, b_ref, w_ref, bias_ref, q_ref, k_ref, v_ref, *, eps):
    x = x_ref[...]
    normed = _layer_norm_f32(x.astype(jnp.float32), a_ref, b_ref, eps)
    # MXU operands stay in the input dtype; accumulate in f32.
    y = jnp.dot(normed.astype(x.dtype), w_ref[...], preferred_element_type=jnp.float32)
    y = y + bias_ref[...].astype(jnp.float32)
    F = q_ref.shape[-1]
    y = y.astype(q_ref.dtype)
    q_ref[...] = y[:, :F]
    k_ref[...] = y[:, F:2 * F]
    v_ref[...] = y[:, 2 * F:3 * F]


def ln_qkv_projection(x2, ln_a, ln_b, w_qkv, b_qkv, *, eps):
    rows, F = x2.shape
    N = w_qkv.shape[1]
    eb = x2.dtype.itemsize
    resident = eb * (F * N) + 4 * (N + 2 * F)
    stream_per_row = 2 * eb * (F + 3 * F)                # double-buffered x in + q/k/v out
    block = _pick_block_rows(rows, stream_per_row, resident)
    out_sds = jax.ShapeDtypeStruct((rows, F), x2.dtype)

    return pl.pallas_call(
        functools.partial(_ln_qkv_kernel, eps=eps),
        out_shape=(out_sds, out_sds, out_sds),
        grid_spec=pltpu.PrefetchScalarGridSpec(
            num_scalar_prefetch=0,
            grid=(pl.cdiv(rows, block),),
            in_specs=[pl.BlockSpec((block, F), lambda i: (i, 0)),
                      _const_spec((1, F)), _const_spec((1, F)),
                      _const_spec((F, N)), _const_spec((1, N))],
            out_specs=[pl.BlockSpec((block, F), lambda i: (i, 0))] * 3,
        ),
        compiler_params=pltpu.CompilerParams(
            dimension_semantics=("parallel",),
            vmem_limit_bytes=_VMEM_LIMIT),
    )(x2,
      ln_a.reshape(1, F).astype(jnp.float32),
      ln_b.reshape(1, F).astype(jnp.float32),
      w_qkv.astype(x2.dtype),
      b_qkv.reshape(1, N).astype(jnp.float32))


# ---------------------------------------------------------------------------
# Kernel 2: multi-head attention, all heads of one batch per grid step.
# Key-padding mask is rebuilt in-kernel from SMEM valid lengths.
# ---------------------------------------------------------------------------
def _attention_kernel(len_ref, q_ref, k_ref, v_ref, o_ref, *, num_heads, scale):
    b = pl.program_id(0)
    valid = len_ref[b]                                   # SMEM scalar load
    q = q_ref[...]                                       # (block_q, F)
    k = k_ref[...]                                       # (S, F)
    v = v_ref[...]                                       # (S, F)
    bq, F = q.shape
    S = k.shape[0]
    dk = F // num_heads

    key_pos = lax.broadcasted_iota(jnp.int32, (bq, S), 1)
    keep = key_pos < valid                               # key-padding mask (1 = attend)

    outs = []
    for h in range(num_heads):                           # static unroll over heads
        qh = q[:, h * dk:(h + 1) * dk]
        kh = k[:, h * dk:(h + 1) * dk]
        vh = v[:, h * dk:(h + 1) * dk]
        s = lax.dot_general(qh, kh, (((1,), (1,)), ((), ())),
                            preferred_element_type=jnp.float32) * scale
        s = jnp.where(keep, s, -1e9)                     # masked_fill(mask == 0, -1e9)
        s = s - jnp.max(s, axis=-1, keepdims=True)
        p = jnp.exp(s)
        p = p * pl.reciprocal(jnp.sum(p, axis=-1, keepdims=True), approx=True)  # EUP slot
        outs.append(jnp.dot(p.astype(vh.dtype), vh, preferred_element_type=jnp.float32))
    # lane-dense (block_q, F) store straight into the (B, S, F) slab
    o_ref[...] = jnp.concatenate(outs, axis=-1).astype(o_ref.dtype)


def multi_head_attention(q, k, v, key_valid_len, *, num_heads):
    """q, k, v: (B, S, F); key_valid_len: (B,) int — keys [0, len) are attended."""
    B, S, F = q.shape
    dk = F // num_heads
    scale = 1.0 / float(dk) ** 0.5
    block_q = _pick_block_q(S)

    return pl.pallas_call(
        functools.partial(_attention_kernel, num_heads=num_heads, scale=scale),
        out_shape=jax.ShapeDtypeStruct((B, S, F), q.dtype),
        grid_spec=pltpu.PrefetchScalarGridSpec(
            num_scalar_prefetch=1,                        # valid lengths live in SMEM
            grid=(B, pl.cdiv(S, block_q)),
            in_specs=[pl.BlockSpec((None, block_q, F), lambda b, qi, vl: (b, qi, 0)),
                      pl.BlockSpec((None, S, F), lambda b, qi, vl: (b, 0, 0)),
                      pl.BlockSpec((None, S, F), lambda b, qi, vl: (b, 0, 0))],
            out_specs=pl.BlockSpec((None, block_q, F), lambda b, qi, vl: (b, qi, 0)),
        ),
        compiler_params=pltpu.CompilerParams(
            dimension_semantics=("parallel", "parallel"),
            vmem_limit_bytes=_VMEM_LIMIT),
    )(key_valid_len.astype(jnp.int32), q, k, v)


# ---------------------------------------------------------------------------
# Kernel 3: output projection + residual + LayerNorm2 + full FFN + residual,
# all fused; x1 and the (rows, d_ff) hidden activation never touch HBM.
# ---------------------------------------------------------------------------
def _oproj_ffn_kernel(attn_ref, x_ref, wo_ref, bo_ref, lna_ref, lnb_ref,
                      w1_ref, bias1_ref, w2_ref, bias2_ref, o_ref, *, eps):
    attn = attn_ref[...]
    dt = attn.dtype
    # sublayer 0 tail: attn @ W_o + b_o + residual
    x1 = jnp.dot(attn, wo_ref[...], preferred_element_type=jnp.float32)
    x1 = x1 + bo_ref[...].astype(jnp.float32) + x_ref[...].astype(jnp.float32)
    # sublayer 1: LayerNorm2 -> W1 -> ReLU -> W2 -> +bias -> +residual
    normed = _layer_norm_f32(x1, lna_ref, lnb_ref, eps)
    h = jnp.dot(normed.astype(dt), w1_ref[...], preferred_element_type=jnp.float32)
    h = jnp.maximum(h + bias1_ref[...].astype(jnp.float32), 0.0)   # stays in VMEM/vregs
    y = jnp.dot(h.astype(dt), w2_ref[...], preferred_element_type=jnp.float32)
    y = y + bias2_ref[...].astype(jnp.float32) + x1
    o_ref[...] = y.astype(o_ref.dtype)


def oproj_ffn(attn2, x2, params, *, eps):
    rows, F = attn2.shape
    dff = params["w_ff1"].shape[1]
    eb = attn2.dtype.itemsize
    resident = eb * (F * F + 2 * F * dff) + 4 * (4 * F + dff)
    stream_per_row = 2 * eb * (3 * F)                    # attn in, x in, out
    block = _pick_block_rows(rows, stream_per_row, resident)

    return pl.pallas_call(
        functools.partial(_oproj_ffn_kernel, eps=eps),
        out_shape=jax.ShapeDtypeStruct((rows, F), attn2.dtype),
        grid_spec=pltpu.PrefetchScalarGridSpec(
            num_scalar_prefetch=0,
            grid=(pl.cdiv(rows, block),),
            in_specs=[pl.BlockSpec((block, F), lambda i: (i, 0)),
                      pl.BlockSpec((block, F), lambda i: (i, 0)),
                      _const_spec((F, F)), _const_spec((1, F)),
                      _const_spec((1, F)), _const_spec((1, F)),
                      _const_spec((F, dff)), _const_spec((1, dff)),
                      _const_spec((dff, F)), _const_spec((1, F))],
            out_specs=pl.BlockSpec((block, F), lambda i: (i, 0)),
        ),
        compiler_params=pltpu.CompilerParams(
            dimension_semantics=("parallel",),
            vmem_limit_bytes=_VMEM_LIMIT),
    )(attn2, x2,
      params["w_o"].astype(attn2.dtype), params["b_o"].reshape(1, F).astype(jnp.float32),
      params["ln2_a"].reshape(1, F).astype(jnp.float32),
      params["ln2_b"].reshape(1, F).astype(jnp.float32),
      params["w_ff1"].astype(attn2.dtype), params["b_ff1"].reshape(1, dff).astype(jnp.float32),
      params["w_ff2"].astype(attn2.dtype), params["b_ff2"].reshape(1, F).astype(jnp.float32))


# ---------------------------------------------------------------------------
# Full encoder layer (eval-mode forward)
# ---------------------------------------------------------------------------
def encoder_layer(x, key_valid_len, params, *, num_heads, eps=1e-6):
    B, S, F = x.shape
    rows = B * S
    x2 = x.reshape(rows, F)                              # free reshape

    q, k, v = ln_qkv_projection(x2, params["ln1_a"], params["ln1_b"],
                                params["w_qkv"], params["b_qkv"], eps=eps)
    attn = multi_head_attention(q.reshape(B, S, F), k.reshape(B, S, F),
                                v.reshape(B, S, F), key_valid_len, num_heads=num_heads)
    out = oproj_ffn(attn.reshape(rows, F), x2, params, eps=eps)
    return out.reshape(B, S, F)


# ---------------------------------------------------------------------------
# Pure-JAX reference (mirrors the PyTorch module in eval mode)
# ---------------------------------------------------------------------------
def _reference_encoder_layer(x, mask, params, num_heads, eps=1e-6):
    B, S, F = x.shape
    H = num_heads
    dk = F // H
    hp = lax.Precision.HIGHEST

    def layer_norm_ref(t, a, b):
        mean = jnp.mean(t, axis=-1, keepdims=True)
        std = jnp.sqrt(jnp.sum((t - mean) ** 2, axis=-1, keepdims=True) / (t.shape[-1] - 1))
        return a * (t - mean) / (std + eps) + b

    h = layer_norm_ref(x, params["ln1_a"], params["ln1_b"])
    qkv = jnp.dot(h, params["w_qkv"], precision=hp) + params["b_qkv"]
    q, k, v = jnp.split(qkv, 3, axis=-1)

    def split_heads(t):
        return t.reshape(B, S, H, dk).transpose(0, 2, 1, 3)

    q, k, v = split_heads(q), split_heads(k), split_heads(v)
    scores = jnp.einsum("bhqd,bhkd->bhqk", q, k, precision=hp) / float(dk) ** 0.5
    scores = jnp.where(mask > 0, scores, -1e9)
    p = jax.nn.softmax(scores, axis=-1)
    attn = jnp.einsum("bhqk,bhkd->bhqd", p, v, precision=hp)
    attn = attn.transpose(0, 2, 1, 3).reshape(B, S, F)
    x1 = x + (jnp.dot(attn, params["w_o"], precision=hp) + params["b_o"])

    h2 = layer_norm_ref(x1, params["ln2_a"], params["ln2_b"])
    ff = jnp.maximum(jnp.dot(h2, params["w_ff1"], precision=hp) + params["b_ff1"], 0.0)
    ff = jnp.dot(ff, params["w_ff2"], precision=hp) + params["b_ff2"]
    return x1 + ff


if __name__ == "__main__":
    key = jax.random.PRNGKey(0)
    batch, seq, d_model, num_heads, d_ff = 2, 8, 32, 4, 64

    keys = jax.random.split(key, 6)
    x = jax.random.normal(keys[0], (batch, seq, d_model), dtype=jnp.float32)

    def init_w(k, shape, scale=0.1):
        return (scale * jax.random.normal(k, shape)).astype(jnp.float32)

    params = {
        "ln1_a": jnp.ones((d_model,), jnp.float32),
        "ln1_b": jnp.zeros((d_model,), jnp.float32),
        "ln2_a": jnp.ones((d_model,), jnp.float32),
        "ln2_b": jnp.zeros((d_model,), jnp.float32),
        "w_qkv": init_w(keys[1], (d_model, 3 * d_model)),
        "b_qkv": jnp.zeros((3 * d_model,), jnp.float32),
        "w_o":   init_w(keys[2], (d_model, d_model)),
        "b_o":   jnp.zeros((d_model,), jnp.float32),
        "w_ff1": init_w(keys[3], (d_model, d_ff)),
        "b_ff1": 0.01 * jnp.ones((d_ff,), jnp.float32),
        "w_ff2": init_w(keys[4], (d_ff, d_model)),
        "b_ff2": jnp.zeros((d_model,), jnp.float32),
    }

    # padding mask: batch 0 attends to all 8 key positions, batch 1 only to the first 6
    key_valid_len = jnp.array([seq, seq - 2], dtype=jnp.int32)

    y = encoder_layer(x, key_valid_len, params, num_heads=num_heads)
    y = jax.block_until_ready(y)

    # reference uses the equivalent dense (B, 1, S, S) mask
    key_pos = jnp.arange(seq)
    mask = (key_pos[None, :] < key_valid_len[:, None]).astype(jnp.float32)
    mask = jnp.broadcast_to(mask[:, None, None, :], (batch, 1, seq, seq))

    ref = _reference_encoder_layer(x, mask, params, num_heads)
    err = float(jnp.max(jnp.abs(y - ref)))
    assert jnp.allclose(y, ref, atol=5e-3, rtol=5e-3), f"mismatch vs reference (max abs err {err})"
    print("KERNEL_OK")
</pallas_src>

<mosaic_0001>
module attributes {stable_mosaic.version = 11 : i64} {
  func.func @_ln_qkv_kernel(%arg0: i32, %arg1: memref<8x32xf32, #tpu.memory_space<vmem>>, %arg2: memref<1x32xf32, #tpu.memory_space<vmem>>, %arg3: memref<1x32xf32, #tpu.memory_space<vmem>>, %arg4: memref<32x96xf32, #tpu.memory_space<vmem>>, %arg5: memref<1x96xf32, #tpu.memory_space<vmem>>, %arg6: memref<8x32xf32, #tpu.memory_space<vmem>>, %arg7: memref<8x32xf32, #tpu.memory_space<vmem>>, %arg8: memref<8x32xf32, #tpu.memory_space<vmem>>) attributes {dimension_semantics = [#tpu.dimension_semantics<parallel>], iteration_bounds = array<i64: 2>, scalar_prefetch = 0 : i64, scratch_operands = 0 : i64, tpu.core_type = #tpu.core_type<tc>, window_params = [{transform_indices = @transform_0, window_bounds = array<i64: 8, 32>}, {pipeline_mode = #tpu.pipeline_mode<synchronous>, transform_indices = @transform_1, window_bounds = array<i64: 1, 32>}, {pipeline_mode = #tpu.pipeline_mode<synchronous>, transform_indices = @transform_2, window_bounds = array<i64: 1, 32>}, {pipeline_mode = #tpu.pipeline_mode<synchronous>, transform_indices = @transform_3, window_bounds = array<i64: 32, 96>}, {pipeline_mode = #tpu.pipeline_mode<synchronous>, transform_indices = @transform_4, window_bounds = array<i64: 1, 96>}, {transform_indices = @transform_5, window_bounds = array<i64: 8, 32>}, {transform_indices = @transform_6, window_bounds = array<i64: 8, 32>}, {transform_indices = @transform_7, window_bounds = array<i64: 8, 32>}]} {
    %c0 = arith.constant 0 : index
    %c0_0 = arith.constant 0 : index
    %0 = vector.load %arg1[%c0, %c0_0] : memref<8x32xf32, #tpu.memory_space<vmem>>, vector<8x32xf32>
    %cst = arith.constant dense<0.000000e+00> : vector<8xf32>
    %1 = vector.multi_reduction <add>, %0, %cst [1] : vector<8x32xf32> to vector<8xf32>
    %2 = vector.shape_cast %1 : vector<8xf32> to vector<8x1xf32>
    %cst_1 = arith.constant 3.200000e+01 : f32
    %3 = vector.broadcast %cst_1 : f32 to vector<8x1xf32>
    %4 = arith.divf %2, %3 : vector<8x1xf32>
    %5 = vector.broadcast %4 : vector<8x1xf32> to vector<8x32xf32>
    %6 = arith.subf %0, %5 : vector<8x32xf32>
    %7 = arith.mulf %6, %6 : vector<8x32xf32>
    %cst_2 = arith.constant dense<0.000000e+00> : vector<8xf32>
    %8 = vector.multi_reduction <add>, %7, %cst_2 [1] : vector<8x32xf32> to vector<8xf32>
    %9 = vector.shape_cast %8 : vector<8xf32> to vector<8x1xf32>
    %cst_3 = arith.constant 0.0322580636 : f32
    %10 = vector.broadcast %cst_3 : f32 to vector<8x1xf32>
    %11 = arith.mulf %9, %10 : vector<8x1xf32>
    %12 = math.sqrt %11 : vector<8x1xf32>
    %cst_4 = arith.constant 9.99999997E-7 : f32
    %13 = vector.broadcast %cst_4 : f32 to vector<8x1xf32>
    %14 = arith.addf %12, %13 : vector<8x1xf32>
    %15 = tpu.reciprocal %14 : vector<8x1xf32> -> vector<8x1xf32>
    %c0_5 = arith.constant 0 : index
    %c0_6 = arith.constant 0 : index
    %16 = vector.load %arg2[%c0_5, %c0_6] : memref<1x32xf32, #tpu.memory_space<vmem>>, vector<1x32xf32>
    %17 = vector.broadcast %15 : vector<8x1xf32> to vector<8x32xf32>
    %18 = arith.mulf %6, %17 : vector<8x32xf32>
    %19 = vector.broadcast %16 : vector<1x32xf32> to vector<8x32xf32>
    %20 = arith.mulf %19, %18 : vector<8x32xf32>
    %c0_7 = arith.constant 0 : index
    %c0_8 = arith.constant 0 : index
    %21 = vector.load %arg3[%c0_7, %c0_8] : memref<1x32xf32, #tpu.memory_space<vmem>>, vector<1x32xf32>
    %22 = vector.broadcast %21 : vector<1x32xf32> to vector<8x32xf32>
    %23 = arith.addf %20, %22 : vector<8x32xf32>
    %c0_9 = arith.constant 0 : index
    %c0_10 = arith.constant 0 : index
    %24 = vector.load %arg4[%c0_9, %c0_10] : memref<32x96xf32, #tpu.memory_space<vmem>>, vector<32x96xf32>
    %cst_11 = arith.constant dense<0.000000e+00> : vector<8x96xf32>
    %25 = tpu.matmul %23, %24, %cst_11 {dimension_numbers = #tpu.dot_dimension_numbers<[1], [0], [0], [1], [0, 0, 1, 1], [], []>} : vector<8x32xf32>, vector<32x96xf32>, vector<8x96xf32> -> vector<8x96xf32>
    %c0_12 = arith.constant 0 : index
    %c0_13 = arith.constant 0 : index
    %26 = vector.load %arg5[%c0_12, %c0_13] : memref<1x96xf32, #tpu.memory_space<vmem>>, vector<1x96xf32>
    %27 = vector.broadcast %26 : vector<1x96xf32> to vector<8x96xf32>
    %28 = arith.addf %25, %27 : vector<8x96xf32>
    %29 = vector.extract_strided_slice %28 {offsets = [0, 0], sizes = [8, 32], strides = [1, 1]} : vector<8x96xf32> to vector<8x32xf32>
    %c0_14 = arith.constant 0 : index
    %c0_15 = arith.constant 0 : index
    %30 = vector.load %arg6[%c0_14, %c0_15] : memref<8x32xf32, #tpu.memory_space<vmem>>, vector<8x32xf32>
    tpu.vector_store %arg6[%c0_14, %c0_15], %29 {strides = array<i32>} : memref<8x32xf32, #tpu.memory_space<vmem>>, vector<8x32xf32>,
    %31 = vector.extract_strided_slice %28 {offsets = [0, 32], sizes = [8, 32], strides = [1, 1]} : vector<8x96xf32> to vector<8x32xf32>
    %c0_16 = arith.constant 0 : index
    %c0_17 = arith.constant 0 : index
    %32 = vector.load %arg7[%c0_16, %c0_17] : memref<8x32xf32, #tpu.memory_space<vmem>>, vector<8x32xf32>
    tpu.vector_store %arg7[%c0_16, %c0_17], %31 {strides = array<i32>} : memref<8x32xf32, #tpu.memory_space<vmem>>, vector<8x32xf32>,
    %33 = vector.extract_strided_slice %28 {offsets = [0, 64], sizes = [8, 32], strides = [1, 1]} : vector<8x96xf32> to vector<8x32xf32>
    %c0_18 = arith.constant 0 : index
    %c0_19 = arith.constant 0 : index
    %34 = vector.load %arg8[%c0_18, %c0_19] : memref<8x32xf32, #tpu.memory_space<vmem>>, vector<8x32xf32>
    tpu.vector_store %arg8[%c0_18, %c0_19], %33 {strides = array<i32>} : memref<8x32xf32, #tpu.memory_space<vmem>>, vector<8x32xf32>,
    return
  }
  func.func @transform_0(%arg0: i32) -> (i32, i32) {
    %c0_i32 = arith.constant 0 : i32
    %c0_i32_0 = arith.constant 0 : i32
    return %arg0, %c0_i32 : i32, i32
  }
  func.func @transform_1(%arg0: i32) -> (i32, i32) {
    %c0_i32 = arith.constant 0 : i32
    %c0_i32_0 = arith.constant 0 : i32
    %c0_i32_1 = arith.constant 0 : i32
    return %c0_i32, %c0_i32_0 : i32, i32
  }
  func.func @transform_2(%arg0: i32) -> (i32, i32) {
    %c0_i32 = arith.constant 0 : i32
    %c0_i32_0 = arith.constant 0 : i32
    %c0_i32_1 = arith.constant 0 : i32
    return %c0_i32, %c0_i32_0 : i32, i32
  }
  func.func @transform_3(%arg0: i32) -> (i32, i32) {
    %c0_i32 = arith.constant 0 : i32
    %c0_i32_0 = arith.constant 0 : i32
    %c0_i32_1 = arith.constant 0 : i32
    return %c0_i32, %c0_i32_0 : i32, i32
  }
  func.func @transform_4(%arg0: i32) -> (i32, i32) {
    %c0_i32 = arith.constant 0 : i32
    %c0_i32_0 = arith.constant 0 : i32
    %c0_i32_1 = arith.constant 0 : i32
    return %c0_i32, %c0_i32_0 : i32, i32
  }
  func.func @transform_5(%arg0: i32) -> (i32, i32) {
    %c0_i32 = arith.constant 0 : i32
    %c0_i32_0 = arith.constant 0 : i32
    return %arg0, %c0_i32 : i32, i32
  }
  func.func @transform_6(%arg0: i32) -> (i32, i32) {
    %c0_i32 = arith.constant 0 : i32
    %c0_i32_0 = arith.constant 0 : i32
    return %arg0, %c0_i32 : i32, i32
  }
  func.func @transform_7(%arg0: i32) -> (i32, i32) {
    %c0_i32 = arith.constant 0 : i32
    %c0_i32_0 = arith.constant 0 : i32
    return %arg0, %c0_i32 : i32, i32
  }
}

</mosaic_0001>

<bundles_post_ra>
// kernel: tpu_custom_call.1
= control target key start
LH: loop header
LB: loop body
LE: loop exit
PB: predicated region body
PF: predicated region fallthrough
CT: control target
= control target key end

     0   :  { %s1231_s0 = inlined_call_operand.hbm [shape: f32[16,32], index: 0, kind: input, shape index: {}]   ;;  %s1232_s1 = inlined_call_operand.hbm [shape: f32[1,32], index: 1, kind: input, shape index: {}]   ;;  %s1233_s2 = inlined_call_operand.vmem [shape: f32[1,32], index: 2, kind: input, shape index: {}]   ;;  %s1234_s3 = inlined_call_operand.hbm [shape: f32[32,96], index: 3, kind: input, shape index: {}]   ;;  %s1235_s4 = inlined_call_operand.vmem [shape: f32[1,96], index: 4, kind: input, shape index: {}]   ;;  %s1236_s5 = inlined_call_operand.hbm [shape: f32[16,32], index: 5, kind: output, shape index: {0}]   ;;  %s1237_s6 = inlined_call_operand.hbm [shape: f32[16,32], index: 6, kind: output, shape index: {1}]   ;;  %s1238_s7 = inlined_call_operand.hbm [shape: f32[16,32], index: 7, kind: output, shape index: {2}]  }
   0x1   :  { %1240 = sst [smem:[#allocation16_spill]] %s1231_s0 }
   0x2   :  { %1241 = sst [smem:[#allocation17_spill]] %s1232_s1 }
   0x3   :  { %13 = vsyncpa [#allocation3], 0 }
   0x4   :  { %15 = vsyncpa [#allocation3 + $0x1], 0 }
   0x5   :  { %16 = vsyncpa [#allocation6], 0 }
   0x6   :  { %17 = vsyncpa [#allocation4], 0 }
   0x7   :  { %19 = vsyncpa [#allocation4 + $0x1], 0 }
   0x8   :  { %20 = vsyncpa [#allocation10], 0 }
   0x9   :  { %22 = vsyncpa [#allocation10 + $0x1], 0  ;;  %s1032_s24 = smov 0   ;;  %s1034_s25 = smov 0  }
   0xa   :  { %s1036_s26 = smov 0   ;;  %s1038_s27 = smov 0  }
   0xb LB: > { %s1053_s28 = sadd.s32 4294967295, %s983_s27   ;;  %s1239_s29 = sadd.s32 4294967294, %s983_s27   ;;  %s983_s27 = sphi %s1038_s27, %s1254_s27   ;;  %s979_s26 = sphi %s1036_s26, %s1253_s26   ;;  %s975_s25 = sphi %s1034_s25, %s1252_s25   ;;  %s971_s24 = sphi %s1032_s24, %s1251_s24  }
   0xc   : > { %p48_p0 = scmp.ne.s32.totalorder %s975_s25, %s971_s24  ;;  %p49_p1 = scmp.eq.s32.totalorder %s1053_s28, 0 }
   0xd   : > { %p156_p2 = scmp.eq.s32.totalorder %s1053_s28, 1  ;;  %p162_p3 = scmp.eq.s32.totalorder %s1239_s29, 1 }
   0xe   : > { %p1064_p4 = por %p49_p1, %p48_p0  ;;  %p650_p5 = scmp.ge.s32.totalorder %s983_s27, 1 }
   0xf   : > { %p1069_p6 = por %p162_p3, %p48_p0  ;;  %p221_p7 = scmp.lt.s32.totalorder %s983_s27, 3 }
  0x10   : > { %s1244_s1 = sld [smem:[#allocation17_spill]]  ;;  %s985_s13 = smov [#allocation5]  }
  0x11   : > { %p1077_p8 = pnand %p650_p5, %p221_p7  ;;  %s235_s14 = sshll.u32 %s985_s13, 4  ;;  %s236_s14 = int_to_ptr.vmem [resolvable:$true] %s235_s14 }
  0x12   : > { %s247_s17 = sshll.u32 %s1234_s3, 4  ;;  %s986_s18 = smov [#allocation7]   ;;  %s248_s17 = int_to_ptr.hbm [resolvable:$true] %s247_s17 }
  0x13   : > { %p688_p10 = pneg %p1077_p8  ;;  %s249_s19 = sshll.u32 %s986_s18, 4  ;;  %s250_s19 = int_to_ptr.vmem [resolvable:$true] %s249_s19 }
  0x14   : > { %s987_s20 = smov 128   ;;  %s988_s21 = smov 8  }
  0x15   : > { %p689_p11 = pnand %p688_p10, %p49_p1  ;;  %s1090_s22 = sadd.s32 1, %s983_s27  }
  0x16   : > { %s233_s11 = sshll.u32 %s1244_s1, 4  ;;  %s32_s23 = ssub.s32 %s983_s27, %s1090_s22  ;;  %s234_s11 = int_to_ptr.hbm [resolvable:$true] %s233_s11 }
  0x17   : > { %691 = dma.hbm_to_vmem [thread:$0]  (!%p689_p11), %s234_s11, 16, %s236_s14, [#allocation6]  }
  0x18   : > { %694 = dma.hbm_to_vmem [thread:$0]  (!%p689_p11), %s248_s17, 512, %s250_s19, [#allocation6], %s987_s20, %s987_s20, %s988_s21  }
  0x19   : > { %p33_p12 = scmp.eq.s32.totalorder %s32_s23, 0  ;;  %s35_s9 = sadd.s32 1, %s979_s26 }
  0x1a   : > { %p42_p13 = scmp.ne.s32.totalorder %s979_s26, %s975_s25  ;;  %p43_p0 = scmp.eq.s32.totalorder %s983_s27, 0 }
  0x1b   : > { %s1099_s10 = scalar_select %p33_p12, %s979_s26, %s35_s9  }
  0x1c   : > { %p44_p3 = por %p43_p0, %p42_p13  ;;  %p1103_p5 = por %p156_p2, %p42_p13 }
  0x1d   : > { %p711_p7 = scmp.lt.s32.totalorder %s983_s27, 2  ;;  %s266_s11 = sand.u32 1, %s979_s26  }
  0x1e   : > { %s654_s14 = sshll.u32 %s266_s11, 3  ;;  %s655_s15 = sshll.u32 %s983_s27, 3 }
  0x1f   : > { %s1247_s0 = sld [smem:[#allocation16_spill]]  ;;  %s270_s19 = scalar_lea.vmem [#allocation2], %s654_s14 }
  0x20   : > { %s278_s20 = sshll.u32 %s270_s19, 4  ;;  %p1113_p10 = pnand %p711_p7, %p44_p3  ;;  %s279_s20 = int_to_ptr.vmem [resolvable:$true] %s278_s20 }
  0x21   : > { %s267_s9 = scalar_lea.sflag [#allocation3], %s266_s11 }
  0x22   : > { %p827_p11 = pneg %p1113_p10 }
  0x25   : > { %s274_s18 = scalar_lea.hbm %s1247_s0, %s655_s15  ;;  %s830_s16 = scalar_lea.hbm %s1247_s0, 16 }
  0x26   : > { %s276_s21 = sshll.u32 %s274_s18, 4  ;;  %s277_s21 = int_to_ptr.hbm [resolvable:$true] %s276_s21 }
  0x27   : > { %s823_s29 = sshra.s32 %s277_s21, 4  ;;  %s824_s29 = int_to_ptr.hbm [resolvable:$true] %s823_s29 }
  0x28   : > { %s825_s1 = scalar_lea.hbm %s824_s29, 8  ;;  %p831_p0 = scmp.lt.s32.totalorder %s824_s29, %s1247_s0 }
  0x29   : > { %p826_p2 = scmp.ne.s32.totalorder %s824_s29, %s825_s1  ;;  %p832_p3 = scmp.lt.s32.totalorder %s830_s16, %s825_s1 }
  0x2b   : > { %p828_p12 = pnand %p827_p11, %p826_p2  ;;  %p833_p7 = por %p832_p3, %p831_p0 }
  0x2d   : > { %p829_p13 = pneg %p828_p12 }
  0x2f   : > { %p834_p9 = pnand %p833_p7, %p829_p13 }
  0x31   : > { %837 = shalt.err (!%p834_p9)
}
  0x32   : > { %698 = dma.hbm_to_vmem [thread:$0]  (!%p1113_p10), %s277_s21, 128, %s279_s20, %s267_s9  }
  0x33   : > { %287 = sbr.rel (%p1077_p8) target bundleno = 607 (0x25f), region = 40  ;;  %s1130_s11 = sand.u32 (!%p1077_p8), 1, %s975_s25  }
  0x34   : > { %s1133_s19 = sshll.u32 (!%p1077_p8), %s1130_s11, 3  ;;  %s290_s29 = scalar_lea.sflag (!%p1077_p8), [#allocation3], %s1130_s11 }
  0x35   : > { %s293_s1 = scalar_lea.vmem (!%p1077_p8), [#allocation2], %s1133_s19 }
  0x38   : > { %954 = dma.done.wait (%p1064_p4), %s290_s29, 128  }
  0x39   : > { %956 = vsyncadd (%p1064_p4), %s290_s29, 4294967168 }
  0x3a   : > { %958 = dma.done.wait (%p49_p1), [#allocation6], 528  }
  0x3b   : > { %960 = vsyncadd (%p49_p1), [#allocation6], 4294966768  ;;  %vm346_vm0 = vcmask 261120   ;;  %v345_v0 = vld [vmem:[%s293_s1] sm:$0xff]  ;;  %v989_v2 = vmov 32.0   ;;  %v402_v17 = vld [vmem:[#allocation7] sm:$0xff] }
  0x3c   : > { %v347_v1 = vsel %vm346_vm0, %v345_v0, 0.0  ;;  %757 = vrcp.f32 %v989_v2  ;;  %v405_v14 = vld [vmem:[#allocation7 + $0x18] sm:$0xff]  ;;  %v404_v15 = vld [vmem:[#allocation7 + $0x10] sm:$0xff]  ;;  %v403_v16 = vld [vmem:[#allocation7 + $0x8] sm:$0xff]  ;;  %s1152_s20 = sshll.u32 %s1053_s28, 3  ;;  %s330_s16 = scalar_lea.vmem [#allocation8], %s1133_s19 }
  0x3d   : > { %348 = vadd.xlane.f32.xlu0 %v347_v1  ;;  %425 = vmatpush.msra.mxu0 %v405_v14  ;;  %v754_v40 = vld [vmem:[#allocation5] ss:$0 sm:$0xff]  ;;  %v755_v43 = vld [vmem:[%s1233_s2] ss:$0 sm:$0xff]  ;;  %s464_s14 = scalar_lea.hbm %s1236_s5, %s1152_s20  ;;  %s466_s17 = sshll.u32 %s330_s16, 4  ;;  %s467_s17 = int_to_ptr.vmem [resolvable:$true] %s466_s17 }
  0x3e   : > { %v756_v46 = vld [vmem:[%s1235_s4] ss:$0 sm:$0xff]  ;;  %s468_s18 = sshll.u32 %s464_s14, 4  ;;  %s990_s29 = smov 96   ;;  %s469_s18 = int_to_ptr.hbm [resolvable:$true] %s468_s18 }
  0x3f   : > { %426 = vmatpush.msra.mxu0 %v404_v15  ;;  %s444_s1 = scalar_lea.sflag [#allocation4], %s1130_s11  ;;  %s867_s30 = sshra.s32 %s469_s18, 4  ;;  %s868_s30 = int_to_ptr.hbm [resolvable:$true] %s867_s30 }
  0x40   : > { %s869_s12 = scalar_lea.hbm %s868_s30, 8  ;;  %s873_s9 = scalar_lea.hbm %s1236_s5, 16 }
  0x41   : > { %427 = vmatpush.msra.mxu0 %v403_v16  ;;  %p870_p1 = scmp.ne.s32.totalorder %s868_s30, %s869_s12  ;;  %p874_p9 = scmp.lt.s32.totalorder %s868_s30, %s1236_s5 }
  0x42   : > { %v758_v3 = vpop.eup %757  ;;  %p875_p10 = scmp.lt.s32.totalorder %s873_s9, %s869_s12 }
  0x43   : > { %v351_v4 = vmul.f32 32.0, %v758_v3  ;;  %vm355_vm1 = vweird.f32 %v758_v3  ;;  %428 = vmatpush.msra.mxu0 %v402_v17  ;;  %p871_p4 = pnand %p870_p1, %p1103_p5 }
  0x44   : > { %p876_p2 = por %p875_p10, %p874_p9 }
  0x45   : > { %v352_v5 = vsub.f32 1.0, %v351_v4  ;;  %p872_p8 = pneg %p871_p4 }
  0x47   : > { %v353_v6 = vmul.f32 %v758_v3, %v352_v5  ;;  %p877_p11 = pnand %p876_p2, %p872_p8 }
  0x49   : > { %v354_v7 = vadd.f32 %v758_v3, %v353_v6 }
  0x4b   : > { %v356_v8 = vsel %vm355_vm1, %v758_v3, %v354_v7 }
  0xb0   : > { %v349_v9 = vpop.xlane.xlu0 %348 }
  0xb1   : > { %v357_v10 = vmul.f32 %v356_v8, %v349_v9 }
  0xb3   : > { %v358_v11 = vsub.f32 %v345_v0, %v357_v10 }
  0xb5   : > { %v359_v12 = vmul.f32 %v358_v11, %v358_v11 }
  0xb7   : > { %v360_v13 = vsel %vm346_vm0, %v359_v12, 0.0 }
  0xb8   : > { %361 = vadd.xlane.f32.xlu0 %v360_v13 }
 0x12b   : > { %v362_v18 = vpop.xlane.xlu0 %361 }
 0x12c   : > { %v363_v19 = vmul.f32 0.032258064, %v362_v18 }
 0x12e   : > { %759 = vrsqrt.f32 %v363_v19  ;;  %vm371_vm2 = vcmp.eq.f32.partialorder %v363_v19, inf  ;;  %v374_v27 = vand.u32 2147483648, %v363_v19  ;;  %vm373_vm3 = vcmp.eq.f32.partialorder %v363_v19, 0.0 }
 0x134   : > { %v760_v20 = vpop.eup %759 }
 0x135   : > { %v365_v21 = vmul.f32 %v760_v20, %v363_v19 }
 0x137   : > { %v366_v22 = vmul.f32 %v760_v20, %v365_v21 }
 0x139   : > { %v367_v23 = vmul.f32 0.5, %v366_v22 }
 0x13b   : > { %v368_v24 = vsub.f32 1.5, %v367_v23 }
 0x13d   : > { %v369_v25 = vmul.f32 %v760_v20, %v368_v24 }
 0x13f   : > { %v370_v26 = vmul.f32 %v369_v25, %v363_v19 }
 0x141   : > { %v372_v28 = vsel %vm371_vm2, %v363_v19, %v370_v26 }
 0x142   : > { %v375_v29 = vsel %vm373_vm3, %v374_v27, %v372_v28 }
 0x143   : > { %v376_v30 = vadd.f32 1e-06, %v375_v29 }
 0x145   : > { %761 = vrcp.f32 %v376_v30  ;;  %v388_v34 = vand.u32 2147483648, %v376_v30  ;;  %v386_v36 = vand.u32 2147483647, %v376_v30  ;;  %vm382_vm5 = vweird.f32 %v376_v30 }
 0x147   : > { %v389_v38 = vor.u32 1.1754944e-38, %v388_v34  ;;  %vm387_vm7 = vcmp.eq.f32.partialorder %v386_v36, 8.507059e+37 }
 0x14b   : > { %v762_v31 = vpop.eup %761 }
 0x14c   : > { %v378_v32 = vmul.f32 %v762_v31, %v376_v30  ;;  %vm383_vm4 = vweird.f32 %v762_v31 }
 0x14d   : > { %vm384_vm6 = vmor %vm382_vm5, %vm383_vm4 }
 0x14e   : > { %v379_v33 = vsub.f32 1.0, %v378_v32 }
 0x150   : > { %v380_v35 = vmul.f32 %v762_v31, %v379_v33 }
 0x152   : > { %v381_v37 = vadd.f32 %v762_v31, %v380_v35 }
 0x154   : > { %v385_v39 = vsel %vm384_vm6, %v762_v31, %v381_v37 }
 0x155   : > { %v390_v41 = vsel %vm387_vm7, %v389_v38, %v385_v39 }
 0x156   : > { %v392_v42 = vmul.f32 %v390_v41, %v358_v11 }
 0x158   : > { %v396_v44 = vmul.f32 %v754_v40, %v392_v42 }
 0x15a   : > { %v401_v45 = vadd.f32 %v755_v43, %v396_v44 }
 0x15c   : > { %663 = vmatmul.msk.f32.vlgmr.msra.gmra.mxu0 %vm346_vm0, %v401_v45 }
 0x1d9   : > { %v430_v47 = vpop.f32.mrf.mxu0 }
 0x1da   : > { %v431_v48 = vadd.f32 %v756_v46, %v430_v47 }
 0x1dc   : > { %435 = vrot.lane.b32.xlu1 %v431_v48, %s990_s29  ;;  %433 = vst.msk [vmem:[%s330_s16] sm:$0xff] %vm346_vm0, %v431_v48 }
 0x1dd   : > { %880 = shalt.err (!%p877_p11)
}
 0x1de   : > { %682 = dma.vmem_to_hbm [thread:$0]  (%p1103_p5), %s467_s17, 128, %s469_s18, %s444_s1  }
 0x1df   : > { %s991_s11 = smov 64   ;;  %s478_s21 = scalar_lea.hbm %s1237_s6, %s1152_s20 }
 0x1e0   : > { %s448_s23 = sand.u32 1, %s1053_s28   ;;  %s337_s30 = scalar_lea.vmem [#allocation9], %s1133_s19 }
 0x1e1   : > { %s480_s12 = sshll.u32 %s337_s30, 4  ;;  %s482_s9 = sshll.u32 %s478_s21, 4  ;;  %s481_s12 = int_to_ptr.vmem [resolvable:$true] %s480_s12  ;;  %s483_s9 = int_to_ptr.hbm [resolvable:$true] %s482_s9 }
 0x1e2   : > { %s492_s17 = scalar_lea.hbm %s1238_s7, %s1152_s20  ;;  %s1185_s18 = scalar_lea.sflag [#allocation10], %s448_s23 }
 0x1e3   : > { %s895_s1 = sshra.s32 %s483_s9, 4  ;;  %s901_s29 = scalar_lea.hbm %s1237_s6, 16  ;;  %s896_s1 = int_to_ptr.hbm [resolvable:$true] %s895_s1 }
 0x1e4   : > { %439 = vrot.lane.b32.xlu1 %v431_v48, %s991_s11  ;;  %s897_s11 = scalar_lea.hbm %s896_s1, 8  ;;  %p902_p3 = scmp.lt.s32.totalorder %s896_s1, %s1237_s6 }
 0x1e5   : > { %p898_p12 = scmp.ne.s32.totalorder %s896_s1, %s897_s11  ;;  %p903_p7 = scmp.lt.s32.totalorder %s901_s29, %s897_s11 }
 0x1e7   : > { %p899_p13 = pnand %p898_p12, %p1103_p5  ;;  %p904_p1 = por %p903_p7, %p902_p3 }
 0x1e9   : > { %p900_p0 = pneg %p899_p13 }
 0x1eb   : > { %p905_p4 = pnand %p904_p1, %p900_p0 }
 0x24e   : > { %v436_v49 = vpop.permute.xlu1 %435 }
 0x24f   : > { %438 = vst.msk [vmem:[%s337_s30] sm:$0xff] %vm346_vm0, %v436_v49 }
 0x250   : > { %908 = shalt.err (!%p905_p4)
}
 0x251   : > { %683 = dma.vmem_to_hbm [thread:$0]  (%p1103_p5), %s481_s12, 128, %s483_s9, %s1185_s18  }
 0x252   : > { %s344_s20 = scalar_lea.vmem [#allocation11], %s1133_s19  ;;  %s496_s30 = sshll.u32 %s492_s17, 4  ;;  %s497_s30 = int_to_ptr.hbm [resolvable:$true] %s496_s30 }
 0x253   : > { %s494_s23 = sshll.u32 %s344_s20, 4  ;;  %s923_s0 = sshra.s32 %s497_s30, 4  ;;  %s495_s23 = int_to_ptr.vmem [resolvable:$true] %s494_s23  ;;  %s924_s0 = int_to_ptr.hbm [resolvable:$true] %s923_s0 }
 0x254   : > { %s925_s15 = scalar_lea.hbm %s924_s0, 8  ;;  %s929_s11 = scalar_lea.hbm %s1238_s7, 16 }
 0x255   : > { %p926_p8 = scmp.ne.s32.totalorder %s924_s0, %s925_s15  ;;  %p930_p2 = scmp.lt.s32.totalorder %s924_s0, %s1238_s7 }
 0x256   : > { %v440_v50 = vpop.permute.xlu1 %439  ;;  %p931_p11 = scmp.lt.s32.totalorder %s929_s11, %s925_s15 }
 0x257   : > { %442 = vst.msk [vmem:[%s344_s20] sm:$0xff] %vm346_vm0, %v440_v50  ;;  %p927_p9 = pnand %p926_p8, %p1103_p5 }
 0x258   : > { %p932_p12 = por %p931_p11, %p930_p2 }
 0x259   : > { %p928_p10 = pneg %p927_p9 }
 0x25b   : > { %p933_p13 = pnand %p932_p12, %p928_p10 }
 0x25d   : > { %936 = shalt.err (!%p933_p13)
}
 0x25e   : > { %684 = dma.vmem_to_hbm [thread:$0]  (%p1103_p5), %s495_s23, 128, %s497_s30, %s1185_s18  }
 0x25f PF: > { %s508_s9 = sand.u32 1, %s971_s24   ;;  %p1249_p0 = scmp.ge.s32.totalorder %s983_s27, 2 }
 0x260   : > { %s509_s17 = scalar_lea.sflag [#allocation4], %s508_s9 }
 0x261   : > { %p700_p3 = pnand %p1249_p0, %p1069_p6 }
 0x263   : > { %p701_p7 = pneg %p700_p3 }
 0x265   : > { %962 = dma.done.wait (%p701_p7), %s509_s17, 128  }
 0x266   : > { %964 = vsyncadd (%p701_p7), %s509_s17, 4294967168  ;;  %s1250_s28 = sadd.s32 4294967294, %s983_s27  }
 0x267   : > { %s518_s16 = sand.u32 1, %s1250_s28  }
 0x268   : > { %s519_s29 = scalar_lea.sflag [#allocation10], %s518_s16 }
 0x269   : > { %966 = dma.done.wait (%p701_p7), %s519_s29, 256  }
 0x26a   : > { %968 = vsyncadd (%p701_p7), %s519_s29, 4294967040  ;;  %p25_p5 = scmp.ge.s32.totalorder %s1090_s22, 4   ;;  %s1251_s24 = smov %s975_s25 }
 0x26b   : > { %s1252_s25 = smov %s979_s26  ;;  %s1253_s26 = smov %s1099_s10 }
 0x26c   : > { %s1254_s27 = smov %s1090_s22  ;;  %27 = sbr.rel (!%p25_p5) target bundleno = 11 (0xb), region = 125 }
 0x271   :  { %535 = vsyncpa [#allocation3], 1 }
 0x272   :  { %537 = vsyncpa [#allocation3 + $0x1], 1 }
 0x273   :  { %538 = vsyncpa [#allocation6], 1 }
 0x274   :  { %539 = vsyncpa [#allocation4], 1 }
 0x275   :  { %541 = vsyncpa [#allocation4 + $0x1], 1 }
 0x276   :  { %542 = vsyncpa [#allocation10], 1 }
 0x277   :  { %544 = vsyncpa [#allocation10 + $0x1], 1 }

</bundles_post_ra>
